<compile_context>
chip_gen: v7x
topology: tpu7x:2x2x1
jax: 0.10.0
libtpu: 0.0.40
codegen_flags: <defaults>
</compile_context>

<pallas_src>
import functools
import math

import numpy as np
import jax
import jax.numpy as jnp
from jax.experimental import pallas as pl
from jax.experimental.pallas import tpu as pltpu


# ---------------------------------------------------------------------------
# Host-side weight construction (faithful NumPy mirror of Bicubic.contribute)
# ---------------------------------------------------------------------------
def _cubic_np(x):
    absx = np.abs(x)
    absx2 = absx * absx
    absx3 = absx2 * absx
    c1 = (absx <= 1).astype(np.float32)
    c2 = ((absx > 1) & (absx <= 2)).astype(np.float32)
    return ((1.5 * absx3 - 2.5 * absx2 + 1.0) * c1
            + (-0.5 * absx3 + 2.5 * absx2 - 4.0 * absx + 2.0) * c2)


def _contribute_np(in_size, out_size, scale):
    """NumPy mirror of the PyTorch `contribute` (Keys a=-0.5, MATLAB-style)."""
    kernel_width = 4.0
    if scale < 1:
        kernel_width = 4.0 / scale
    x0 = np.arange(1, out_size[0] + 1, dtype=np.float32)
    x1 = np.arange(1, out_size[1] + 1, dtype=np.float32)
    u0 = x0 / scale + 0.5 * (1.0 - 1.0 / scale)
    u1 = x1 / scale + 0.5 * (1.0 - 1.0 / scale)
    left0 = np.floor(u0 - kernel_width / 2.0)
    left1 = np.floor(u1 - kernel_width / 2.0)
    P = int(np.ceil(kernel_width) + 2)
    indice0 = left0[:, None] + np.arange(P, dtype=np.float32)[None, :]
    indice1 = left1[:, None] + np.arange(P, dtype=np.float32)[None, :]
    mid0 = u0[:, None] - indice0
    mid1 = u1[:, None] - indice1
    if scale < 1:
        weight0 = scale * _cubic_np(mid0 * scale)
        weight1 = scale * _cubic_np(mid1 * scale)
    else:
        weight0 = _cubic_np(mid0)
        weight1 = _cubic_np(mid1)
    weight0 = weight0 / weight0.sum(axis=1, keepdims=True)
    weight1 = weight1 / weight1.sum(axis=1, keepdims=True)
    indice0 = np.clip(indice0, 1, in_size[0])
    indice1 = np.clip(indice1, 1, in_size[1])
    # drop columns whose first-row weight is exactly zero (as the module does)
    keep0 = weight0[0] != 0
    keep1 = weight1[0] != 0
    return (weight0[:, keep0].astype(np.float32),
            weight1[:, keep1].astype(np.float32),
            indice0[:, keep0].astype(np.int64),
            indice1[:, keep1].astype(np.int64))


@functools.lru_cache(maxsize=None)
def _resample_matrices(h, w, oh, ow, scale):
    """Dense W_h (oh,h) and W_w (ow,w) built by scatter-adding the taps."""
    w0, w1, i0, i1 = _contribute_np((h, w), (oh, ow), scale)
    Wh = np.zeros((oh, h), dtype=np.float32)
    np.add.at(Wh, (np.arange(oh)[:, None], i0 - 1), w0)
    Ww = np.zeros((ow, w), dtype=np.float32)
    np.add.at(Ww, (np.arange(ow)[:, None], i1 - 1), w1)
    return Wh, Ww


# ---------------------------------------------------------------------------
# Kernel: one channel tile, width pass first (fused), then per-channel height
# ---------------------------------------------------------------------------
def _bicubic_kernel(x_ref, wh_ref, wwt_ref, o_ref, *, tile_n, h, oh):
    # x_ref:   (tile_n*h, w)    input slab (channels stacked along sublanes)
    # wh_ref:  (oh, h)          height-resample weights
    # wwt_ref: (w, ow)          width-resample weights, pre-transposed on host
    # o_ref:   (tile_n*oh, ow)  output slab
    # Width pass: ONE fused MXU matmul over the whole tile (M = tile_n*h).
    t = jnp.dot(x_ref[...], wwt_ref[...], preferred_element_type=jnp.float32)
    t = t.astype(x_ref.dtype)            # no-op in f32 mode; keeps bf16 mode bf16
    wh = wh_ref[...]
    # Height pass: per-channel matmuls on the 4x-smaller intermediate.
    # Slices are Python-static, so no dynamic-index relayout.
    for n in range(tile_n):
        o_ref[n * oh:(n + 1) * oh, :] = jnp.dot(
            wh, t[n * h:(n + 1) * h, :],
            preferred_element_type=jnp.float32).astype(o_ref.dtype)


# ---------------------------------------------------------------------------
# Tiling heuristics (generation aware)
# ---------------------------------------------------------------------------
def _round_up(v, m):
    return -(-v // m) * m


def _chip_info():
    kind = ""
    try:
        kind = jax.devices()[0].device_kind.lower()
    except Exception:
        pass
    is_v7 = "v7" in kind
    is_v5e = ("v5e" in kind) or ("v5 lite" in kind) or ("v5litepod" in kind)
    try:
        vmem_cap = int(pltpu.get_tpu_info().vmem_capacity_bytes)
    except Exception:
        vmem_cap = (64 if is_v7 else 128) * 1024 * 1024
    return {
        "is_v7": is_v7,
        "num_tc": 2 if is_v7 else 1,
        "target_m": 128 if is_v5e else 256,          # MXU row target for fused matmul
        "vmem_limit": max(32 * 1024 * 1024,
                          min(vmem_cap * 3 // 4, 100 * 1024 * 1024)),
    }


def _choose_tile_n(bc, h, w, oh, ow, info, elem_bytes):
    # --- VMEM model: f32/bf16 bytes per channel inside one grid step --------
    w_pad = _round_up(w, 128)
    ow_pad = _round_up(ow, 128)
    per_ch = (2 * h * w_pad * elem_bytes          # input block, double-buffered
              + 2 * oh * ow_pad * 4               # output block, double-buffered
              + h * ow_pad * 4                    # width-pass intermediate t
              + oh * ow_pad * 4)                  # per-channel height result
    weight_bytes = 2 * (_round_up(oh, 8) * _round_up(h, 128)
                        + _round_up(w, 8) * ow_pad) * elem_bytes
    frac = 0.45 if info["is_v7"] else 0.55        # extra headroom on 64 MiB v7x VMEM
    budget = max(int(info["vmem_limit"] * frac) - weight_bytes, per_ch)
    t_vmem = max(1, budget // per_ch)

    t_unroll = 64                                  # bound Python unrolling of height loop
    tile = max(1, min(t_vmem, t_unroll, bc))

    # Grid-step floor (DMA pipelining; both TensorCores on v7x), but only when
    # each step still feeds the MXU with M = tile*h >= target_m.
    min_steps = 4 if info["num_tc"] >= 2 else 2
    if bc >= min_steps:
        steps_cap = -(-bc // min_steps)
        if steps_cap * h >= info["target_m"]:
            tile = min(tile, steps_cap)

    # Sublane alignment: tile*h and tile*oh must be multiples of 8
    # (channel padding in the wrapper covers any round-up past bc).
    g_h = 8 // math.gcd(h, 8)
    g_oh = 8 // math.gcd(oh, 8)
    g = g_h * g_oh // math.gcd(g_h, g_oh)
    return int(_round_up(tile, g))


# ---------------------------------------------------------------------------
# pallas_call builder + wrapper
# ---------------------------------------------------------------------------
def _make_call(tile_n, n_total, h, w, oh, ow, vmem_limit, single_buffer_weights):
    def weight_spec(shape):
        if single_buffer_weights:
            # Constant index_map -> fetched once; 1 buffer saves VMEM.
            return pl.BlockSpec(shape, lambda i: (0, 0),
                                pipeline_mode=pl.Buffered(1))
        return pl.BlockSpec(shape, lambda i: (0, 0))

    kernel = functools.partial(_bicubic_kernel, tile_n=tile_n, h=h, oh=oh)
    return pl.pallas_call(
        kernel,
        out_shape=jax.ShapeDtypeStruct((n_total * oh, ow), jnp.float32),
        grid_spec=pltpu.PrefetchScalarGridSpec(
            num_scalar_prefetch=0,
            grid=(n_total // tile_n,),
            in_specs=[
                pl.BlockSpec((tile_n * h, w), lambda i: (i, 0)),   # x slab
                weight_spec((oh, h)),                               # W_h
                weight_spec((w, ow)),                               # W_w^T
            ],
            out_specs=pl.BlockSpec((tile_n * oh, ow), lambda i: (i, 0)),
        ),
        compiler_params=pltpu.CompilerParams(
            dimension_semantics=("parallel",),
            vmem_limit_bytes=int(vmem_limit),
        ),
    )


def bicubic(x, scale=1.0 / 4.0, tile_n=None, use_bf16=False):
    b, c, h, w = x.shape
    oh, ow = int(h * scale), int(w * scale)
    bc = b * c

    Wh, Ww = _resample_matrices(h, w, oh, ow, float(scale))
    dt = jnp.bfloat16 if use_bf16 else jnp.float32      # bf16: faster, looser precision
    wh = jnp.asarray(Wh, dtype=dt)                                  # (oh, h)
    wwt = jnp.asarray(np.ascontiguousarray(Ww.T), dtype=dt)         # (w, ow)

    info = _chip_info()
    if tile_n is None:
        tile_n = _choose_tile_n(bc, h, w, oh, ow, info, 2 if use_bf16 else 4)
    tile_n = max(1, int(tile_n))

    x3 = x.reshape(bc, h, w).astype(dt)
    n_pad = (-bc) % tile_n
    if n_pad:
        x3 = jnp.pad(x3, ((0, n_pad), (0, 0), (0, 0)))
    n_total = bc + n_pad
    x2 = x3.reshape(n_total * h, w)           # lane/sublane-dense 2D input slab

    args = (tile_n, n_total, h, w, oh, ow, info["vmem_limit"])
    try:
        out2 = _make_call(*args, single_buffer_weights=True)(x2, wh, wwt)
    except Exception:
        # Narrow intent: retry only without the pl.Buffered(1) request; a
        # genuine compile/VMEM error reproduces (and surfaces) here as well.
        out2 = _make_call(*args, single_buffer_weights=False)(x2, wh, wwt)

    return out2.reshape(n_total, oh, ow)[:bc].reshape(b, c, oh, ow)


# ---------------------------------------------------------------------------
# References
# ---------------------------------------------------------------------------
def _bicubic_ref_jnp(x, scale=1.0 / 4.0):
    """Plain-JAX dense-matrix reference, same contraction order as the kernel."""
    b, c, h, w = x.shape
    oh, ow = int(h * scale), int(w * scale)
    Wh, Ww = _resample_matrices(h, w, oh, ow, float(scale))
    t = jnp.einsum("bchw,qw->bchq", x.astype(jnp.float32), jnp.asarray(Ww))
    return jnp.einsum("ph,bchq->bcpq", jnp.asarray(Wh), t)


def _bicubic_ref_np(x_np, scale=1.0 / 4.0):
    """Exact NumPy mirror of the PyTorch forward (gather + weighted sum)."""
    b, c, h, w = x_np.shape
    oh, ow = int(h * scale), int(w * scale)
    w0, w1, i0, i1 = _contribute_np((h, w), (oh, ow), float(scale))
    out = (x_np[:, :, i0 - 1, :] * w0[None, None, :, :, None]).sum(3)   # (b,c,oh,w)
    A = out.transpose(0, 1, 3, 2)                                       # (b,c,w,oh)
    out = (A[:, :, i1 - 1, :] * w1[None, None, :, :, None]).sum(3)      # (b,c,ow,oh)
    return out.transpose(0, 1, 3, 2)                                    # (b,c,oh,ow)


if __name__ == "__main__":
    key = jax.random.PRNGKey(0)
    x = jax.random.normal(key, (2, 4, 16, 16), dtype=jnp.float32)

    out = jax.block_until_ready(bicubic(x, scale=1.0 / 4.0))
    assert out.shape == (2, 4, 4, 4), out.shape

    # Plumbing check: plain-JAX dense-matrix reference, same contraction order
    # and matmul precision regime as the kernel.
    ref_jnp = jax.block_until_ready(_bicubic_ref_jnp(x, scale=1.0 / 4.0))
    np.testing.assert_allclose(np.asarray(out), np.asarray(ref_jnp),
                               rtol=1e-5, atol=1e-5)

    # Semantics check: exact NumPy mirror of the PyTorch gather/weighted-sum
    # forward; loose tolerance only covers TPU matmul rounding, any structural
    # bug (indexing / transpose / normalization) would be O(1).
    ref_np = _bicubic_ref_np(np.asarray(x, dtype=np.float32), scale=1.0 / 4.0)
    np.testing.assert_allclose(np.asarray(out), ref_np, rtol=5e-2, atol=5e-2)

    print("KERNEL_OK")
</pallas_src>

<mosaic_0001>
module attributes {stable_mosaic.version = 11 : i64} {
  func.func @_bicubic_kernel(%arg0: i32, %arg1: memref<128x16xf32, #tpu.memory_space<vmem>>, %arg2: memref<4x16xf32, #tpu.memory_space<vmem>>, %arg3: memref<16x4xf32, #tpu.memory_space<vmem>>, %arg4: memref<32x4xf32, #tpu.memory_space<vmem>>) attributes {dimension_semantics = [#tpu.dimension_semantics<parallel>], iteration_bounds = array<i64: 1>, scalar_prefetch = 0 : i64, scratch_operands = 0 : i64, tpu.core_type = #tpu.core_type<tc>, window_params = [{transform_indices = @transform_0, window_bounds = array<i64: 128, 16>}, {pipeline_mode = #tpu.pipeline_mode<synchronous>, transform_indices = @transform_1, window_bounds = array<i64: 4, 16>}, {pipeline_mode = #tpu.pipeline_mode<synchronous>, transform_indices = @transform_2, window_bounds = array<i64: 16, 4>}, {transform_indices = @transform_3, window_bounds = array<i64: 32, 4>}]} {
    %c0 = arith.constant 0 : index
    %c0_0 = arith.constant 0 : index
    %0 = vector.load %arg1[%c0, %c0_0] : memref<128x16xf32, #tpu.memory_space<vmem>>, vector<128x16xf32>
    %c0_1 = arith.constant 0 : index
    %c0_2 = arith.constant 0 : index
    %1 = vector.load %arg3[%c0_1, %c0_2] : memref<16x4xf32, #tpu.memory_space<vmem>>, vector<16x4xf32>
    %cst = arith.constant dense<0.000000e+00> : vector<128x4xf32>
    %2 = tpu.matmul %0, %1, %cst {dimension_numbers = #tpu.dot_dimension_numbers<[1], [0], [0], [1], [0, 0, 1, 1], [], []>} : vector<128x16xf32>, vector<16x4xf32>, vector<128x4xf32> -> vector<128x4xf32>
    %c0_3 = arith.constant 0 : index
    %c0_4 = arith.constant 0 : index
    %3 = vector.load %arg2[%c0_3, %c0_4] : memref<4x16xf32, #tpu.memory_space<vmem>>, vector<4x16xf32>
    %4 = vector.extract_strided_slice %2 {offsets = [0, 0], sizes = [16, 4], strides = [1, 1]} : vector<128x4xf32> to vector<16x4xf32>
    %cst_5 = arith.constant dense<0.000000e+00> : vector<4x4xf32>
    %5 = tpu.matmul %3, %4, %cst_5 {dimension_numbers = #tpu.dot_dimension_numbers<[1], [0], [0], [1], [0, 0, 1, 1], [], []>} : vector<4x16xf32>, vector<16x4xf32>, vector<4x4xf32> -> vector<4x4xf32>
    %c0_6 = arith.constant 0 : index
    %c0_7 = arith.constant 0 : index
    %6 = vector.load %arg4[%c0_6, %c0_7] : memref<32x4xf32, #tpu.memory_space<vmem>>, vector<4x4xf32>
    tpu.vector_store %arg4[%c0_6, %c0_7], %5 {strides = array<i32>} : memref<32x4xf32, #tpu.memory_space<vmem>>, vector<4x4xf32>,
    %7 = vector.extract_strided_slice %2 {offsets = [16, 0], sizes = [16, 4], strides = [1, 1]} : vector<128x4xf32> to vector<16x4xf32>
    %cst_8 = arith.constant dense<0.000000e+00> : vector<4x4xf32>
    %8 = tpu.matmul %3, %7, %cst_8 {dimension_numbers = #tpu.dot_dimension_numbers<[1], [0], [0], [1], [0, 0, 1, 1], [], []>} : vector<4x16xf32>, vector<16x4xf32>, vector<4x4xf32> -> vector<4x4xf32>
    %c4 = arith.constant 4 : index
    %c0_9 = arith.constant 0 : index
    %9 = vector.load %arg4[%c4, %c0_9] : memref<32x4xf32, #tpu.memory_space<vmem>>, vector<4x4xf32>
    tpu.vector_store %arg4[%c4, %c0_9], %8 {strides = array<i32>} : memref<32x4xf32, #tpu.memory_space<vmem>>, vector<4x4xf32>,
    %10 = vector.extract_strided_slice %2 {offsets = [32, 0], sizes = [16, 4], strides = [1, 1]} : vector<128x4xf32> to vector<16x4xf32>
    %cst_10 = arith.constant dense<0.000000e+00> : vector<4x4xf32>
    %11 = tpu.matmul %3, %10, %cst_10 {dimension_numbers = #tpu.dot_dimension_numbers<[1], [0], [0], [1], [0, 0, 1, 1], [], []>} : vector<4x16xf32>, vector<16x4xf32>, vector<4x4xf32> -> vector<4x4xf32>
    %c8 = arith.constant 8 : index
    %c0_11 = arith.constant 0 : index
    %12 = vector.load %arg4[%c8, %c0_11] : memref<32x4xf32, #tpu.memory_space<vmem>>, vector<4x4xf32>
    tpu.vector_store %arg4[%c8, %c0_11], %11 {strides = array<i32>} : memref<32x4xf32, #tpu.memory_space<vmem>>, vector<4x4xf32>,
    %13 = vector.extract_strided_slice %2 {offsets = [48, 0], sizes = [16, 4], strides = [1, 1]} : vector<128x4xf32> to vector<16x4xf32>
    %cst_12 = arith.constant dense<0.000000e+00> : vector<4x4xf32>
    %14 = tpu.matmul %3, %13, %cst_12 {dimension_numbers = #tpu.dot_dimension_numbers<[1], [0], [0], [1], [0, 0, 1, 1], [], []>} : vector<4x16xf32>, vector<16x4xf32>, vector<4x4xf32> -> vector<4x4xf32>
    %c12 = arith.constant 12 : index
    %c0_13 = arith.constant 0 : index
    %15 = vector.load %arg4[%c12, %c0_13] : memref<32x4xf32, #tpu.memory_space<vmem>>, vector<4x4xf32>
    tpu.vector_store %arg4[%c12, %c0_13], %14 {strides = array<i32>} : memref<32x4xf32, #tpu.memory_space<vmem>>, vector<4x4xf32>,
    %16 = vector.extract_strided_slice %2 {offsets = [64, 0], sizes = [16, 4], strides = [1, 1]} : vector<128x4xf32> to vector<16x4xf32>
    %cst_14 = arith.constant dense<0.000000e+00> : vector<4x4xf32>
    %17 = tpu.matmul %3, %16, %cst_14 {dimension_numbers = #tpu.dot_dimension_numbers<[1], [0], [0], [1], [0, 0, 1, 1], [], []>} : vector<4x16xf32>, vector<16x4xf32>, vector<4x4xf32> -> vector<4x4xf32>
    %c16 = arith.constant 16 : index
    %c0_15 = arith.constant 0 : index
    %18 = vector.load %arg4[%c16, %c0_15] : memref<32x4xf32, #tpu.memory_space<vmem>>, vector<4x4xf32>
    tpu.vector_store %arg4[%c16, %c0_15], %17 {strides = array<i32>} : memref<32x4xf32, #tpu.memory_space<vmem>>, vector<4x4xf32>,
    %19 = vector.extract_strided_slice %2 {offsets = [80, 0], sizes = [16, 4], strides = [1, 1]} : vector<128x4xf32> to vector<16x4xf32>
    %cst_16 = arith.constant dense<0.000000e+00> : vector<4x4xf32>
    %20 = tpu.matmul %3, %19, %cst_16 {dimension_numbers = #tpu.dot_dimension_numbers<[1], [0], [0], [1], [0, 0, 1, 1], [], []>} : vector<4x16xf32>, vector<16x4xf32>, vector<4x4xf32> -> vector<4x4xf32>
    %c20 = arith.constant 20 : index
    %c0_17 = arith.constant 0 : index
    %21 = vector.load %arg4[%c20, %c0_17] : memref<32x4xf32, #tpu.memory_space<vmem>>, vector<4x4xf32>
    tpu.vector_store %arg4[%c20, %c0_17], %20 {strides = array<i32>} : memref<32x4xf32, #tpu.memory_space<vmem>>, vector<4x4xf32>,
    %22 = vector.extract_strided_slice %2 {offsets = [96, 0], sizes = [16, 4], strides = [1, 1]} : vector<128x4xf32> to vector<16x4xf32>
    %cst_18 = arith.constant dense<0.000000e+00> : vector<4x4xf32>
    %23 = tpu.matmul %3, %22, %cst_18 {dimension_numbers = #tpu.dot_dimension_numbers<[1], [0], [0], [1], [0, 0, 1, 1], [], []>} : vector<4x16xf32>, vector<16x4xf32>, vector<4x4xf32> -> vector<4x4xf32>
    %c24 = arith.constant 24 : index
    %c0_19 = arith.constant 0 : index
    %24 = vector.load %arg4[%c24, %c0_19] : memref<32x4xf32, #tpu.memory_space<vmem>>, vector<4x4xf32>
    tpu.vector_store %arg4[%c24, %c0_19], %23 {strides = array<i32>} : memref<32x4xf32, #tpu.memory_space<vmem>>, vector<4x4xf32>,
    %25 = vector.extract_strided_slice %2 {offsets = [112, 0], sizes = [16, 4], strides = [1, 1]} : vector<128x4xf32> to vector<16x4xf32>
    %cst_20 = arith.constant dense<0.000000e+00> : vector<4x4xf32>
    %26 = tpu.matmul %3, %25, %cst_20 {dimension_numbers = #tpu.dot_dimension_numbers<[1], [0], [0], [1], [0, 0, 1, 1], [], []>} : vector<4x16xf32>, vector<16x4xf32>, vector<4x4xf32> -> vector<4x4xf32>
    %c28 = arith.constant 28 : index
    %c0_21 = arith.constant 0 : index
    %27 = vector.load %arg4[%c28, %c0_21] : memref<32x4xf32, #tpu.memory_space<vmem>>, vector<4x4xf32>
    tpu.vector_store %arg4[%c28, %c0_21], %26 {strides = array<i32>} : memref<32x4xf32, #tpu.memory_space<vmem>>, vector<4x4xf32>,
    return
  }
  func.func @transform_0(%arg0: i32) -> (i32, i32) {
    %c0_i32 = arith.constant 0 : i32
    %c0_i32_0 = arith.constant 0 : i32
    return %arg0, %c0_i32 : i32, i32
  }
  func.func @transform_1(%arg0: i32) -> (i32, i32) {
    %c0_i32 = arith.constant 0 : i32
    %c0_i32_0 = arith.constant 0 : i32
    %c0_i32_1 = arith.constant 0 : i32
    return %c0_i32, %c0_i32_0 : i32, i32
  }
  func.func @transform_2(%arg0: i32) -> (i32, i32) {
    %c0_i32 = arith.constant 0 : i32
    %c0_i32_0 = arith.constant 0 : i32
    %c0_i32_1 = arith.constant 0 : i32
    return %c0_i32, %c0_i32_0 : i32, i32
  }
  func.func @transform_3(%arg0: i32) -> (i32, i32) {
    %c0_i32 = arith.constant 0 : i32
    %c0_i32_0 = arith.constant 0 : i32
    return %arg0, %c0_i32 : i32, i32
  }
}

module attributes {stable_mosaic.version = 11 : i64} {
  func.func @_bicubic_kernel(%arg0: i32, %arg1: memref<128x16xf32, #tpu.memory_space<vmem>>, %arg2: memref<4x16xf32, #tpu.memory_space<vmem>>, %arg3: memref<16x4xf32, #tpu.memory_space<vmem>>, %arg4: memref<32x4xf32, #tpu.memory_space<vmem>>) attributes {dimension_semantics = [#tpu.dimension_semantics<parallel>], iteration_bounds = array<i64: 1>, scalar_prefetch = 0 : i64, scratch_operands = 0 : i64, tpu.core_type = #tpu.core_type<tc>, window_params = [{transform_indices = @transform_0, window_bounds = array<i64: 128, 16>}, {pipeline_mode = #tpu.pipeline_mode<synchronous>, transform_indices = @transform_1, window_bounds = array<i64: 4, 16>}, {pipeline_mode = #tpu.pipeline_mode<synchronous>, transform_indices = @transform_2, window_bounds = array<i64: 16, 4>}, {transform_indices = @transform_3, window_bounds = array<i64: 32, 4>}]} {
    %c0 = arith.constant 0 : index
    %c0_0 = arith.constant 0 : index
    %0 = vector.load %arg1[%c0, %c0_0] : memref<128x16xf32, #tpu.memory_space<vmem>>, vector<128x16xf32>
    %c0_1 = arith.constant 0 : index
    %c0_2 = arith.constant 0 : index
    %1 = vector.load %arg3[%c0_1, %c0_2] : memref<16x4xf32, #tpu.memory_space<vmem>>, vector<16x4xf32>
    %cst = arith.constant dense<0.000000e+00> : vector<128x4xf32>
    %2 = tpu.matmul %0, %1, %cst {dimension_numbers = #tpu.dot_dimension_numbers<[1], [0], [0], [1], [0, 0, 1, 1], [], []>} : vector<128x16xf32>, vector<16x4xf32>, vector<128x4xf32> -> vector<128x4xf32>
    %c0_3 = arith.constant 0 : index
    %c0_4 = arith.constant 0 : index
    %3 = vector.load %arg2[%c0_3, %c0_4] : memref<4x16xf32, #tpu.memory_space<vmem>>, vector<4x16xf32>
    %4 = vector.extract_strided_slice %2 {offsets = [0, 0], sizes = [16, 4], strides = [1, 1]} : vector<128x4xf32> to vector<16x4xf32>
    %cst_5 = arith.constant dense<0.000000e+00> : vector<4x4xf32>
    %5 = tpu.matmul %3, %4, %cst_5 {dimension_numbers = #tpu.dot_dimension_numbers<[1], [0], [0], [1], [0, 0, 1, 1], [], []>} : vector<4x16xf32>, vector<16x4xf32>, vector<4x4xf32> -> vector<4x4xf32>
    %c0_6 = arith.constant 0 : index
    %c0_7 = arith.constant 0 : index
    %6 = vector.load %arg4[%c0_6, %c0_7] : memref<32x4xf32, #tpu.memory_space<vmem>>, vector<4x4xf32>
    tpu.vector_store %arg4[%c0_6, %c0_7], %5 {strides = array<i32>} : memref<32x4xf32, #tpu.memory_space<vmem>>, vector<4x4xf32>,
    %7 = vector.extract_strided_slice %2 {offsets = [16, 0], sizes = [16, 4], strides = [1, 1]} : vector<128x4xf32> to vector<16x4xf32>
    %cst_8 = arith.constant dense<0.000000e+00> : vector<4x4xf32>
    %8 = tpu.matmul %3, %7, %cst_8 {dimension_numbers = #tpu.dot_dimension_numbers<[1], [0], [0], [1], [0, 0, 1, 1], [], []>} : vector<4x16xf32>, vector<16x4xf32>, vector<4x4xf32> -> vector<4x4xf32>
    %c4 = arith.constant 4 : index
    %c0_9 = arith.constant 0 : index
    %9 = vector.load %arg4[%c4, %c0_9] : memref<32x4xf32, #tpu.memory_space<vmem>>, vector<4x4xf32>
    tpu.vector_store %arg4[%c4, %c0_9], %8 {strides = array<i32>} : memref<32x4xf32, #tpu.memory_space<vmem>>, vector<4x4xf32>,
    %10 = vector.extract_strided_slice %2 {offsets = [32, 0], sizes = [16, 4], strides = [1, 1]} : vector<128x4xf32> to vector<16x4xf32>
    %cst_10 = arith.constant dense<0.000000e+00> : vector<4x4xf32>
    %11 = tpu.matmul %3, %10, %cst_10 {dimension_numbers = #tpu.dot_dimension_numbers<[1], [0], [0], [1], [0, 0, 1, 1], [], []>} : vector<4x16xf32>, vector<16x4xf32>, vector<4x4xf32> -> vector<4x4xf32>
    %c8 = arith.constant 8 : index
    %c0_11 = arith.constant 0 : index
    %12 = vector.load %arg4[%c8, %c0_11] : memref<32x4xf32, #tpu.memory_space<vmem>>, vector<4x4xf32>
    tpu.vector_store %arg4[%c8, %c0_11], %11 {strides = array<i32>} : memref<32x4xf32, #tpu.memory_space<vmem>>, vector<4x4xf32>,
    %13 = vector.extract_strided_slice %2 {offsets = [48, 0], sizes = [16, 4], strides = [1, 1]} : vector<128x4xf32> to vector<16x4xf32>
    %cst_12 = arith.constant dense<0.000000e+00> : vector<4x4xf32>
    %14 = tpu.matmul %3, %13, %cst_12 {dimension_numbers = #tpu.dot_dimension_numbers<[1], [0], [0], [1], [0, 0, 1, 1], [], []>} : vector<4x16xf32>, vector<16x4xf32>, vector<4x4xf32> -> vector<4x4xf32>
    %c12 = arith.constant 12 : index
    %c0_13 = arith.constant 0 : index
    %15 = vector.load %arg4[%c12, %c0_13] : memref<32x4xf32, #tpu.memory_space<vmem>>, vector<4x4xf32>
    tpu.vector_store %arg4[%c12, %c0_13], %14 {strides = array<i32>} : memref<32x4xf32, #tpu.memory_space<vmem>>, vector<4x4xf32>,
    %16 = vector.extract_strided_slice %2 {offsets = [64, 0], sizes = [16, 4], strides = [1, 1]} : vector<128x4xf32> to vector<16x4xf32>
    %cst_14 = arith.constant dense<0.000000e+00> : vector<4x4xf32>
    %17 = tpu.matmul %3, %16, %cst_14 {dimension_numbers = #tpu.dot_dimension_numbers<[1], [0], [0], [1], [0, 0, 1, 1], [], []>} : vector<4x16xf32>, vector<16x4xf32>, vector<4x4xf32> -> vector<4x4xf32>
    %c16 = arith.constant 16 : index
    %c0_15 = arith.constant 0 : index
    %18 = vector.load %arg4[%c16, %c0_15] : memref<32x4xf32, #tpu.memory_space<vmem>>, vector<4x4xf32>
    tpu.vector_store %arg4[%c16, %c0_15], %17 {strides = array<i32>} : memref<32x4xf32, #tpu.memory_space<vmem>>, vector<4x4xf32>,
    %19 = vector.extract_strided_slice %2 {offsets = [80, 0], sizes = [16, 4], strides = [1, 1]} : vector<128x4xf32> to vector<16x4xf32>
    %cst_16 = arith.constant dense<0.000000e+00> : vector<4x4xf32>
    %20 = tpu.matmul %3, %19, %cst_16 {dimension_numbers = #tpu.dot_dimension_numbers<[1], [0], [0], [1], [0, 0, 1, 1], [], []>} : vector<4x16xf32>, vector<16x4xf32>, vector<4x4xf32> -> vector<4x4xf32>
    %c20 = arith.constant 20 : index
    %c0_17 = arith.constant 0 : index
    %21 = vector.load %arg4[%c20, %c0_17] : memref<32x4xf32, #tpu.memory_space<vmem>>, vector<4x4xf32>
    tpu.vector_store %arg4[%c20, %c0_17], %20 {strides = array<i32>} : memref<32x4xf32, #tpu.memory_space<vmem>>, vector<4x4xf32>,
    %22 = vector.extract_strided_slice %2 {offsets = [96, 0], sizes = [16, 4], strides = [1, 1]} : vector<128x4xf32> to vector<16x4xf32>
    %cst_18 = arith.constant dense<0.000000e+00> : vector<4x4xf32>
    %23 = tpu.matmul %3, %22, %cst_18 {dimension_numbers = #tpu.dot_dimension_numbers<[1], [0], [0], [1], [0, 0, 1, 1], [], []>} : vector<4x16xf32>, vector<16x4xf32>, vector<4x4xf32> -> vector<4x4xf32>
    %c24 = arith.constant 24 : index
    %c0_19 = arith.constant 0 : index
    %24 = vector.load %arg4[%c24, %c0_19] : memref<32x4xf32, #tpu.memory_space<vmem>>, vector<4x4xf32>
    tpu.vector_store %arg4[%c24, %c0_19], %23 {strides = array<i32>} : memref<32x4xf32, #tpu.memory_space<vmem>>, vector<4x4xf32>,
    %25 = vector.extract_strided_slice %2 {offsets = [112, 0], sizes = [16, 4], strides = [1, 1]} : vector<128x4xf32> to vector<16x4xf32>
    %cst_20 = arith.constant dense<0.000000e+00> : vector<4x4xf32>
    %26 = tpu.matmul %3, %25, %cst_20 {dimension_numbers = #tpu.dot_dimension_numbers<[1], [0], [0], [1], [0, 0, 1, 1], [], []>} : vector<4x16xf32>, vector<16x4xf32>, vector<4x4xf32> -> vector<4x4xf32>
    %c28 = arith.constant 28 : index
    %c0_21 = arith.constant 0 : index
    %27 = vector.load %arg4[%c28, %c0_21] : memref<32x4xf32, #tpu.memory_space<vmem>>, vector<4x4xf32>
    tpu.vector_store %arg4[%c28, %c0_21], %26 {strides = array<i32>} : memref<32x4xf32, #tpu.memory_space<vmem>>, vector<4x4xf32>,
    return
  }
  func.func @transform_0(%arg0: i32) -> (i32, i32) {
    %c0_i32 = arith.constant 0 : i32
    %c0_i32_0 = arith.constant 0 : i32
    return %arg0, %c0_i32 : i32, i32
  }
  func.func @transform_1(%arg0: i32) -> (i32, i32) {
    %c0_i32 = arith.constant 0 : i32
    %c0_i32_0 = arith.constant 0 : i32
    %c0_i32_1 = arith.constant 0 : i32
    return %c0_i32, %c0_i32_0 : i32, i32
  }
  func.func @transform_2(%arg0: i32) -> (i32, i32) {
    %c0_i32 = arith.constant 0 : i32
    %c0_i32_0 = arith.constant 0 : i32
    %c0_i32_1 = arith.constant 0 : i32
    return %c0_i32, %c0_i32_0 : i32, i32
  }
  func.func @transform_3(%arg0: i32) -> (i32, i32) {
    %c0_i32 = arith.constant 0 : i32
    %c0_i32_0 = arith.constant 0 : i32
    return %arg0, %c0_i32 : i32, i32
  }
}

</mosaic_0001>

<bundles_post_ra>
// kernel: tpu_custom_call.1
= control target key start
LH: loop header
LB: loop body
LE: loop exit
PB: predicated region body
PF: predicated region fallthrough
CT: control target
= control target key end

     0   :  { %8 = vsyncpa [#allocation3], 0  ;;  %s1271_s0 = inlined_call_operand.hbm [shape: f32[128,16], index: 0, kind: input, shape index: {}]   ;;  %s1272_s1 = inlined_call_operand.hbm [shape: f32[4,16], index: 1, kind: input, shape index: {}]   ;;  %s1273_s2 = inlined_call_operand.hbm [shape: f32[16,4], index: 2, kind: input, shape index: {}]   ;;  %s1274_s3 = inlined_call_operand.hbm [shape: f32[32,4], index: 3, kind: output, shape index: {}]  }
   0x1   :  { %9 = vsyncpa [#allocation6], 0 }
   0x2   :  { %10 = vsyncpa [#allocation4], 0  ;;  %s1138_s12 = smov [#allocation5]   ;;  %s1139_s14 = smov [#allocation2]  }
   0x3   :  { %s29_s13 = sshll.u32 %s1138_s12, 4  ;;  %s16_s15 = sshll.u32 %s1139_s14, 4  ;;  %s30_s13 = int_to_ptr.vmem [resolvable:$true] %s29_s13  ;;  %s1167_s15 = int_to_ptr.vmem [resolvable:$true] %s16_s15 }
   0x4   :  { %s1044_s18 = scalar_lea.hbm %s1272_s1, 64 }
   0x5   :  { %p1045_p0 = scmp.ne.s32.totalorder %s1272_s1, %s1044_s18  ;;  %p1048_p1 = scmp.lt.u32.totalorder %s1044_s18, %s1272_s1 }
   0x7   :  { %p1050_p2 = pnand %p1048_p1, %p1045_p0 }
   0x9   :  { %1053 = shalt.err (!%p1050_p2)
}
   0xa   :  { %s1054_s23 = scalar_lea.vmem %s30_s13, 64  ;;  %p1059_p4 = scmp.lt.s32.totalorder %s30_s13, %s30_s13 }
   0xb   :  { %p1055_p3 = scmp.ne.s32.totalorder %s30_s13, %s1054_s23  ;;  %p1060_p5 = scmp.lt.s32.totalorder %s1054_s23, %s1054_s23 }
   0xd   :  { %p1061_p6 = por %p1060_p5, %p1059_p4 }
   0xf   :  { %p1062_p7 = pnand %p1061_p6, %p1055_p3 }
  0x11   :  { %1065 = shalt.err (!%p1062_p7)
}
  0x12   :  { %32 = dma.hbm_to_vmem [thread:$0]  %s1272_s1, 64, %s30_s13, [#allocation6]  }
  0x13   :  { %s1066_s28 = scalar_lea.hbm %s1271_s0, 2048 }
  0x14   :  { %p1067_p8 = scmp.ne.s32.totalorder %s1271_s0, %s1066_s28  ;;  %p1070_p9 = scmp.lt.u32.totalorder %s1066_s28, %s1271_s0 }
  0x16   :  { %p1072_p10 = pnand %p1070_p9, %p1067_p8 }
  0x18   :  { %1075 = shalt.err (!%p1072_p10)
}
  0x19   :  { %s1076_s6 = scalar_lea.vmem %s1167_s15, 2048  ;;  %p1081_p12 = scmp.lt.s32.totalorder %s1167_s15, %s1167_s15 }
  0x1a   :  { %p1077_p11 = scmp.ne.s32.totalorder %s1167_s15, %s1076_s6  ;;  %p1082_p13 = scmp.lt.s32.totalorder %s1076_s6, %s1076_s6 }
  0x1c   :  { %p1083_p0 = por %p1082_p13, %p1081_p12 }
  0x1e   :  { %p1084_p1 = pnand %p1083_p0, %p1077_p11 }
  0x20   :  { %1087 = shalt.err (!%p1084_p1)
}
  0x21   :  { %s1140_s1 = smov 128   ;;  %s1141_s7 = smov 8  }
  0x22   :  { %22 = dma.hbm_to_vmem [thread:$0]  %s1271_s0, 2048, %s1167_s15, [#allocation3], %s1140_s1, %s1140_s1, %s1141_s7  }
  0x23   :  { %s1142_s10 = smov [#allocation7]   ;;  %s1088_s14 = scalar_lea.hbm %s1273_s2, 256 }
  0x24   :  { %s38_s11 = sshll.u32 %s1142_s10, 4  ;;  %p1089_p2 = scmp.ne.s32.totalorder %s1273_s2, %s1088_s14  ;;  %s39_s11 = int_to_ptr.vmem [resolvable:$true] %s38_s11 }
  0x25   :  { %p1092_p3 = scmp.lt.u32.totalorder %s1088_s14, %s1273_s2 }
  0x27   :  { %p1094_p4 = pnand %p1092_p3, %p1089_p2 }
  0x29   :  { %1097 = shalt.err (!%p1094_p4)
}
  0x2a   :  { %s1098_s20 = scalar_lea.vmem %s39_s11, 256  ;;  %p1103_p6 = scmp.lt.s32.totalorder %s39_s11, %s39_s11 }
  0x2b   :  { %p1099_p5 = scmp.ne.s32.totalorder %s39_s11, %s1098_s20  ;;  %p1104_p7 = scmp.lt.s32.totalorder %s1098_s20, %s1098_s20 }
  0x2d   :  { %p1105_p8 = por %p1104_p7, %p1103_p6 }
  0x2f   :  { %p1106_p9 = pnand %p1105_p8, %p1099_p5 }
  0x31   :  { %1109 = shalt.err (!%p1106_p9)
}
  0x32   :  { %44 = dma.hbm_to_vmem [thread:$0]  %s1273_s2, 256, %s39_s11, [#allocation6], %s1140_s1, %s1140_s1, %s1141_s7  }
  0x33   :  { %1132 = dma.done.wait [#allocation3], 2048  }
  0x34   :  { %1133 = vsyncadd [#allocation3], 4294965248 }
  0x35   :  { %1134 = dma.done.wait [#allocation6], 320  }
  0x36   :  { %1135 = vsyncadd [#allocation6], 4294966976  ;;  %vm72_vm0 = vcmask 130048   ;;  %v70_v0 = vld [vmem:[#allocation7] sm:$0xff]  ;;  %v71_v1 = vld [vmem:[#allocation7 + $0x8] sm:$0xff]  ;;  %v1143_v19 = vmov 0.0|0.0  }
  0x37   :  { %v54_v2 = vld [vmem:[#allocation2] sm:$0xff]  ;;  %v1007_v3 = vpack.c.bf16 %v71_v1, %v70_v0  ;;  %v55_v4 = vld [vmem:[#allocation2 + $0x8] sm:$0xff]  ;;  %v56_v5 = vld [vmem:[#allocation2 + $0x10] sm:$0xff]  ;;  %1011 = vmatprep.subr.bf16.mxu1 %v1143_v19  ;;  %vm1144_vm1 = vmmov 0   ;;  %v1145_v20 = vmov 0.0   ;;  %vm340_vm2 = vcmask 27648  }
  0x38   :  { %927 = vmatprep.mubr.msk.f32.mxu0 %vm72_vm0, %v54_v2  ;;  %v57_v6 = vld [vmem:[#allocation2 + $0x18] sm:$0xff]  ;;  %v58_v7 = vld [vmem:[#allocation2 + $0x20] sm:$0xff]  ;;  %v59_v8 = vld [vmem:[#allocation2 + $0x28] sm:$0xff]  ;;  %955 = vmatprep.mubr.msk.f32.mxu1 %vm1144_vm1, %v1145_v20  ;;  %s1146_s2 = smov [#allocation8]  }
  0x39   :  { %1008 = vmatprep.subr.bf16.mxu0 %v1007_v3  ;;  %v60_v9 = vld [vmem:[#allocation2 + $0x30] sm:$0xff]  ;;  %v61_v10 = vld [vmem:[#allocation2 + $0x38] sm:$0xff]  ;;  %v62_v11 = vld [vmem:[#allocation2 + $0x40] sm:$0xff]  ;;  %s844_s21 = sshll.u32 %s1146_s2, 4  ;;  %s845_s21 = int_to_ptr.vmem [resolvable:$true] %s844_s21 }
  0x3a   :  { %1010 = vmatpush3.bf16.msra.mxu0 %v1007_v3  ;;  %v63_v12 = vld [vmem:[#allocation2 + $0x48] sm:$0xff]  ;;  %v64_v13 = vld [vmem:[#allocation2 + $0x50] sm:$0xff]  ;;  %v65_v14 = vld [vmem:[#allocation2 + $0x58] sm:$0xff]  ;;  %s1110_s22 = scalar_lea.vmem %s845_s21, 512  ;;  %p1115_p11 = scmp.lt.s32.totalorder %s845_s21, %s845_s21 }
  0x3b   :  { %v66_v15 = vld [vmem:[#allocation2 + $0x60] sm:$0xff]  ;;  %v67_v16 = vld [vmem:[#allocation2 + $0x68] sm:$0xff]  ;;  %v68_v17 = vld [vmem:[#allocation2 + $0x70] sm:$0xff]  ;;  %p1111_p10 = scmp.ne.s32.totalorder %s845_s21, %s1110_s22  ;;  %p1116_p12 = scmp.lt.s32.totalorder %s1110_s22, %s1110_s22 }
  0x3c   :  { %v69_v18 = vld [vmem:[#allocation2 + $0x78] sm:$0xff]  ;;  %v266_v25 = vld [vmem:[#allocation5] sm:$0xf] }
  0x3d   :  { %928 = vmatmul.mubr.msk.f32.vlgmr.msra.gmra.mrb[0].mxu0 %vm72_vm0, %v55_v4  ;;  %p1117_p13 = por %p1116_p12, %p1115_p11 }
  0x3e   :  { %930 = vmatprep.mubr.msk.f32.mxu0 %vm72_vm0, %v56_v5 }
  0x3f   :  { %p1118_p0 = pnand %p1117_p13, %p1111_p10 }
  0x41   :  { %931 = vmatmul.mubr.msk.f32.gmra.mrb[2].mxu0 %vm72_vm0, %v57_v6 }
  0x42   :  { %933 = vmatprep.mubr.msk.f32.mxu0 %vm72_vm0, %v58_v7 }
  0x45   :  { %934 = vmatmul.mubr.msk.f32.gmra.mrb[4].mxu0 %vm72_vm0, %v59_v8 }
  0x46   :  { %936 = vmatprep.mubr.msk.f32.mxu0 %vm72_vm0, %v60_v9 }
  0x49   :  { %937 = vmatmul.mubr.msk.f32.gmra.mrb[6].mxu0 %vm72_vm0, %v61_v10 }
  0x4a   :  { %939 = vmatprep.mubr.msk.f32.mxu0 %vm72_vm0, %v62_v11 }
  0x4d   :  { %940 = vmatmul.mubr.msk.f32.gmra.mrb[8].mxu0 %vm72_vm0, %v63_v12 }
  0x4e   :  { %942 = vmatprep.mubr.msk.f32.mxu0 %vm72_vm0, %v64_v13 }
  0x51   :  { %943 = vmatmul.mubr.msk.f32.gmra.mrb[10].mxu0 %vm72_vm0, %v65_v14 }
  0x52   :  { %945 = vmatprep.mubr.msk.f32.mxu0 %vm72_vm0, %v66_v15 }
  0x55   :  { %946 = vmatmul.mubr.msk.f32.gmra.mrb[12].mxu0 %vm72_vm0, %v67_v16 }
  0x56   :  { %948 = vmatprep.mubr.msk.f32.mxu0 %vm72_vm0, %v68_v17 }
  0x59   :  { %949 = vmatmul.mubr.msk.f32.gmra.mrb[14].mxu0 %vm72_vm0, %v69_v18 }
 0x110   :  { %v929_v21 = vpop.f32.mrb[0].mxu0 }
 0x111   :  { %v187_v22 = vpop.f32.mrb[1].mxu0 }
 0x112   :  { %v1012_v23 = vpack.c.bf16 %v929_v21, %v187_v22 }
 0x114   :  { %v932_v24 = vpop.f32.mrb[2].mxu0  ;;  %1013 = vmatpush3.bf16.msra.mxu1 %v1012_v23 }
 0x115   :  { %v197_v26 = vpop.f32.mrb[3].mxu0  ;;  %1014 = vmatprep.subr.bf16.mxu1 %v1143_v19 }
 0x116   :  { %v1015_v27 = vpack.c.bf16 %v932_v24, %v197_v26 }
 0x117   :  { %956 = vmatmul.mubr.msk.f32.vlgmr.msra.gmra.mrb[0].mxu1 %vm72_vm0, %v266_v25 }
 0x118   :  { %v935_v28 = vpop.f32.mrb[4].mxu0  ;;  %1016 = vmatpush3.bf16.msra.mxu1 %v1015_v27  ;;  %962 = vmatprep.mubr.msk.f32.mxu1 %vm1144_vm1, %v1145_v20 }
 0x119   :  { %v207_v29 = vpop.f32.mrb[5].mxu0  ;;  %1017 = vmatprep.subr.bf16.mxu1 %v1143_v19 }
 0x11a   :  { %v1018_v30 = vpack.c.bf16 %v935_v28, %v207_v29 }
 0x11b   :  { %963 = vmatmul.mubr.msk.f32.vlgmr.msra.gmra.mrb[2].mxu1 %vm72_vm0, %v266_v25 }
 0x11c   :  { %v938_v31 = vpop.f32.mrb[6].mxu0  ;;  %1019 = vmatpush3.bf16.msra.mxu1 %v1018_v30  ;;  %969 = vmatprep.mubr.msk.f32.mxu1 %vm1144_vm1, %v1145_v20 }
 0x11d   :  { %v217_v32 = vpop.f32.mrb[7].mxu0  ;;  %1020 = vmatprep.subr.bf16.mxu1 %v1143_v19 }
 0x11e   :  { %v1021_v33 = vpack.c.bf16 %v938_v31, %v217_v32 }
 0x11f   :  { %970 = vmatmul.mubr.msk.f32.vlgmr.msra.gmra.mrb[4].mxu1 %vm72_vm0, %v266_v25 }
 0x120   :  { %v941_v34 = vpop.f32.mrb[8].mxu0  ;;  %1022 = vmatpush3.bf16.msra.mxu1 %v1021_v33  ;;  %976 = vmatprep.mubr.msk.f32.mxu1 %vm1144_vm1, %v1145_v20 }
 0x121   :  { %v227_v35 = vpop.f32.mrb[9].mxu0  ;;  %1023 = vmatprep.subr.bf16.mxu1 %v1143_v19 }
 0x122   :  { %v1024_v36 = vpack.c.bf16 %v941_v34, %v227_v35 }
 0x123   :  { %977 = vmatmul.mubr.msk.f32.vlgmr.msra.gmra.mrb[6].mxu1 %vm72_vm0, %v266_v25 }
 0x124   :  { %v944_v37 = vpop.f32.mrb[10].mxu0  ;;  %1025 = vmatpush3.bf16.msra.mxu1 %v1024_v36  ;;  %983 = vmatprep.mubr.msk.f32.mxu1 %vm1144_vm1, %v1145_v20 }
 0x125   :  { %v237_v38 = vpop.f32.mrb[11].mxu0  ;;  %1026 = vmatprep.subr.bf16.mxu1 %v1143_v19 }
 0x126   :  { %v1027_v39 = vpack.c.bf16 %v944_v37, %v237_v38 }
 0x127   :  { %984 = vmatmul.mubr.msk.f32.vlgmr.msra.gmra.mrb[8].mxu1 %vm72_vm0, %v266_v25 }
 0x128   :  { %v947_v40 = vpop.f32.mrb[12].mxu0  ;;  %1028 = vmatpush3.bf16.msra.mxu1 %v1027_v39  ;;  %990 = vmatprep.mubr.msk.f32.mxu1 %vm1144_vm1, %v1145_v20 }
 0x129   :  { %v247_v41 = vpop.f32.mrb[13].mxu0  ;;  %1029 = vmatprep.subr.bf16.mxu1 %v1143_v19 }
 0x12a   :  { %v1030_v42 = vpack.c.bf16 %v947_v40, %v247_v41 }
 0x12b   :  { %991 = vmatmul.mubr.msk.f32.vlgmr.msra.gmra.mrb[10].mxu1 %vm72_vm0, %v266_v25 }
 0x12c   :  { %v950_v43 = vpop.f32.mrb[14].mxu0  ;;  %1031 = vmatpush3.bf16.msra.mxu1 %v1030_v42  ;;  %997 = vmatprep.mubr.msk.f32.mxu1 %vm1144_vm1, %v1145_v20 }
 0x12d   :  { %v257_v44 = vpop.f32.mrb[15].mxu0  ;;  %1032 = vmatprep.subr.bf16.mxu1 %v1143_v19 }
 0x12e   :  { %v1033_v45 = vpack.c.bf16 %v950_v43, %v257_v44 }
 0x12f   :  { %998 = vmatmul.mubr.msk.f32.vlgmr.msra.gmra.mrb[12].mxu1 %vm72_vm0, %v266_v25 }
 0x130   :  { %1034 = vmatpush3.bf16.msra.mxu1 %v1033_v45  ;;  %1004 = vmatprep.mubr.msk.f32.mxu1 %vm1144_vm1, %v1145_v20 }
 0x133   :  { %1005 = vmatmul.mubr.msk.f32.vlgmr.msra.gmra.mrb[14].mxu1 %vm72_vm0, %v266_v25 }
 0x1ea   :  { %v336_v46 = vpop.f32.mrb[0].mxu1 }
 0x1eb   :  { %341 = vst.msk [vmem:[#allocation8] sm:$0xf] %vm340_vm2, %v336_v46  ;;  %v957_v47 = vpop.f32.mrb[1].mxu1 }
 0x1ee   :  { %v408_v48 = vpop.f32.mrb[2].mxu1 }
 0x1ef   :  { %412 = vst.msk [vmem:[#allocation8 + $0x4] sm:$0xf] %vm340_vm2, %v408_v48  ;;  %v964_v49 = vpop.f32.mrb[3].mxu1 }
 0x1f2   :  { %v479_v50 = vpop.f32.mrb[4].mxu1 }
 0x1f3   :  { %483 = vst.msk [vmem:[#allocation8 + $0x8] sm:$0xf] %vm340_vm2, %v479_v50  ;;  %v971_v51 = vpop.f32.mrb[5].mxu1 }
 0x1f6   :  { %v550_v52 = vpop.f32.mrb[6].mxu1 }
 0x1f7   :  { %554 = vst.msk [vmem:[#allocation8 + $0xc] sm:$0xf] %vm340_vm2, %v550_v52  ;;  %v978_v53 = vpop.f32.mrb[7].mxu1 }
 0x1fa   :  { %v621_v54 = vpop.f32.mrb[8].mxu1 }
 0x1fb   :  { %625 = vst.msk [vmem:[#allocation8 + $0x10] sm:$0xf] %vm340_vm2, %v621_v54  ;;  %v985_v55 = vpop.f32.mrb[9].mxu1 }
 0x1fe   :  { %v692_v56 = vpop.f32.mrb[10].mxu1 }
 0x1ff   :  { %696 = vst.msk [vmem:[#allocation8 + $0x14] sm:$0xf] %vm340_vm2, %v692_v56  ;;  %v992_v57 = vpop.f32.mrb[11].mxu1 }
 0x202   :  { %v763_v58 = vpop.f32.mrb[12].mxu1 }
 0x203   :  { %767 = vst.msk [vmem:[#allocation8 + $0x18] sm:$0xf] %vm340_vm2, %v763_v58  ;;  %v999_v59 = vpop.f32.mrb[13].mxu1 }
 0x206   :  { %v834_v60 = vpop.f32.mrb[14].mxu1 }
 0x207   :  { %838 = vst.msk [vmem:[#allocation8 + $0x1c] sm:$0xf] %vm340_vm2, %v834_v60  ;;  %v1006_v61 = vpop.f32.mrb[15].mxu1 }
 0x208   :  { %1121 = shalt.err (!%p1118_p0)
}
 0x209   :  { %s1122_s25 = scalar_lea.hbm %s1274_s3, 512 }
 0x20a   :  { %p1123_p1 = scmp.ne.s32.totalorder %s1274_s3, %s1122_s25  ;;  %p1126_p2 = scmp.lt.u32.totalorder %s1122_s25, %s1274_s3 }
 0x20c   :  { %p1128_p3 = pnand %p1126_p2, %p1123_p1 }
 0x20e   :  { %1131 = shalt.err (!%p1128_p3)
}
 0x20f   :  { %850 = dma.vmem_to_hbm [thread:$0]  %s845_s21, 512, %s1274_s3, [#allocation4], %s1140_s1, %s1140_s1, %s1141_s7  }
 0x210   :  { %1136 = dma.done.wait [#allocation4], 512  }
 0x211   :  { %1137 = vsyncadd [#allocation4], 4294966784 }
 0x212   :  { %854 = vsyncpa [#allocation3], 1 }
 0x213   :  { %855 = vsyncpa [#allocation6], 1 }
 0x214   :  { %856 = vsyncpa [#allocation4], 1 }

// kernel: tpu_custom_call.1
= control target key start
LH: loop header
LB: loop body
LE: loop exit
PB: predicated region body
PF: predicated region fallthrough
CT: control target
= control target key end

     0   :  { %8 = vsyncpa [#allocation3], 0  ;;  %s1271_s0 = inlined_call_operand.hbm [shape: f32[128,16], index: 0, kind: input, shape index: {}]   ;;  %s1272_s1 = inlined_call_operand.hbm [shape: f32[4,16], index: 1, kind: input, shape index: {}]   ;;  %s1273_s2 = inlined_call_operand.hbm [shape: f32[16,4], index: 2, kind: input, shape index: {}]   ;;  %s1274_s3 = inlined_call_operand.hbm [shape: f32[32,4], index: 3, kind: output, shape index: {}]  }
   0x1   :  { %9 = vsyncpa [#allocation6], 0 }
   0x2   :  { %10 = vsyncpa [#allocation4], 0  ;;  %s1138_s12 = smov [#allocation5]   ;;  %s1139_s14 = smov [#allocation2]  }
   0x3   :  { %s29_s13 = sshll.u32 %s1138_s12, 4  ;;  %s16_s15 = sshll.u32 %s1139_s14, 4  ;;  %s30_s13 = int_to_ptr.vmem [resolvable:$true] %s29_s13  ;;  %s1167_s15 = int_to_ptr.vmem [resolvable:$true] %s16_s15 }
   0x4   :  { %s1044_s18 = scalar_lea.hbm %s1272_s1, 64 }
   0x5   :  { %p1045_p0 = scmp.ne.s32.totalorder %s1272_s1, %s1044_s18  ;;  %p1048_p1 = scmp.lt.u32.totalorder %s1044_s18, %s1272_s1 }
   0x7   :  { %p1050_p2 = pnand %p1048_p1, %p1045_p0 }
   0x9   :  { %1053 = shalt.err (!%p1050_p2)
}
   0xa   :  { %s1054_s23 = scalar_lea.vmem %s30_s13, 64  ;;  %p1059_p4 = scmp.lt.s32.totalorder %s30_s13, %s30_s13 }
   0xb   :  { %p1055_p3 = scmp.ne.s32.totalorder %s30_s13, %s1054_s23  ;;  %p1060_p5 = scmp.lt.s32.totalorder %s1054_s23, %s1054_s23 }
   0xd   :  { %p1061_p6 = por %p1060_p5, %p1059_p4 }
   0xf   :  { %p1062_p7 = pnand %p1061_p6, %p1055_p3 }
  0x11   :  { %1065 = shalt.err (!%p1062_p7)
}
  0x12   :  { %32 = dma.hbm_to_vmem [thread:$0]  %s1272_s1, 64, %s30_s13, [#allocation6]  }
  0x13   :  { %s1066_s28 = scalar_lea.hbm %s1271_s0, 2048 }
  0x14   :  { %p1067_p8 = scmp.ne.s32.totalorder %s1271_s0, %s1066_s28  ;;  %p1070_p9 = scmp.lt.u32.totalorder %s1066_s28, %s1271_s0 }
  0x16   :  { %p1072_p10 = pnand %p1070_p9, %p1067_p8 }
  0x18   :  { %1075 = shalt.err (!%p1072_p10)
}
  0x19   :  { %s1076_s6 = scalar_lea.vmem %s1167_s15, 2048  ;;  %p1081_p12 = scmp.lt.s32.totalorder %s1167_s15, %s1167_s15 }
  0x1a   :  { %p1077_p11 = scmp.ne.s32.totalorder %s1167_s15, %s1076_s6  ;;  %p1082_p13 = scmp.lt.s32.totalorder %s1076_s6, %s1076_s6 }
  0x1c   :  { %p1083_p0 = por %p1082_p13, %p1081_p12 }
  0x1e   :  { %p1084_p1 = pnand %p1083_p0, %p1077_p11 }
  0x20   :  { %1087 = shalt.err (!%p1084_p1)
}
  0x21   :  { %s1140_s1 = smov 128   ;;  %s1141_s7 = smov 8  }
  0x22   :  { %22 = dma.hbm_to_vmem [thread:$0]  %s1271_s0, 2048, %s1167_s15, [#allocation3], %s1140_s1, %s1140_s1, %s1141_s7  }
  0x23   :  { %s1142_s10 = smov [#allocation7]   ;;  %s1088_s14 = scalar_lea.hbm %s1273_s2, 256 }
  0x24   :  { %s38_s11 = sshll.u32 %s1142_s10, 4  ;;  %p1089_p2 = scmp.ne.s32.totalorder %s1273_s2, %s1088_s14  ;;  %s39_s11 = int_to_ptr.vmem [resolvable:$true] %s38_s11 }
  0x25   :  { %p1092_p3 = scmp.lt.u32.totalorder %s1088_s14, %s1273_s2 }
  0x27   :  { %p1094_p4 = pnand %p1092_p3, %p1089_p2 }
  0x29   :  { %1097 = shalt.err (!%p1094_p4)
}
  0x2a   :  { %s1098_s20 = scalar_lea.vmem %s39_s11, 256  ;;  %p1103_p6 = scmp.lt.s32.totalorder %s39_s11, %s39_s11 }
  0x2b   :  { %p1099_p5 = scmp.ne.s32.totalorder %s39_s11, %s1098_s20  ;;  %p1104_p7 = scmp.lt.s32.totalorder %s1098_s20, %s1098_s20 }
  0x2d   :  { %p1105_p8 = por %p1104_p7, %p1103_p6 }
  0x2f   :  { %p1106_p9 = pnand %p1105_p8, %p1099_p5 }
  0x31   :  { %1109 = shalt.err (!%p1106_p9)
}
  0x32   :  { %44 = dma.hbm_to_vmem [thread:$0]  %s1273_s2, 256, %s39_s11, [#allocation6], %s1140_s1, %s1140_s1, %s1141_s7  }
  0x33   :  { %1132 = dma.done.wait [#allocation3], 2048  }
  0x34   :  { %1133 = vsyncadd [#allocation3], 4294965248 }
  0x35   :  { %1134 = dma.done.wait [#allocation6], 320  }
  0x36   :  { %1135 = vsyncadd [#allocation6], 4294966976  ;;  %vm72_vm0 = vcmask 130048   ;;  %v70_v0 = vld [vmem:[#allocation7] sm:$0xff]  ;;  %v71_v1 = vld [vmem:[#allocation7 + $0x8] sm:$0xff]  ;;  %v1143_v19 = vmov 0.0|0.0  }
  0x37   :  { %v54_v2 = vld [vmem:[#allocation2] sm:$0xff]  ;;  %v1007_v3 = vpack.c.bf16 %v71_v1, %v70_v0  ;;  %v55_v4 = vld [vmem:[#allocation2 + $0x8] sm:$0xff]  ;;  %v56_v5 = vld [vmem:[#allocation2 + $0x10] sm:$0xff]  ;;  %1011 = vmatprep.subr.bf16.mxu1 %v1143_v19  ;;  %vm1144_vm1 = vmmov 0   ;;  %v1145_v20 = vmov 0.0   ;;  %vm340_vm2 = vcmask 27648  }
  0x38   :  { %927 = vmatprep.mubr.msk.f32.mxu0 %vm72_vm0, %v54_v2  ;;  %v57_v6 = vld [vmem:[#allocation2 + $0x18] sm:$0xff]  ;;  %v58_v7 = vld [vmem:[#allocation2 + $0x20] sm:$0xff]  ;;  %v59_v8 = vld [vmem:[#allocation2 + $0x28] sm:$0xff]  ;;  %955 = vmatprep.mubr.msk.f32.mxu1 %vm1144_vm1, %v1145_v20  ;;  %s1146_s2 = smov [#allocation8]  }
  0x39   :  { %1008 = vmatprep.subr.bf16.mxu0 %v1007_v3  ;;  %v60_v9 = vld [vmem:[#allocation2 + $0x30] sm:$0xff]  ;;  %v61_v10 = vld [vmem:[#allocation2 + $0x38] sm:$0xff]  ;;  %v62_v11 = vld [vmem:[#allocation2 + $0x40] sm:$0xff]  ;;  %s844_s21 = sshll.u32 %s1146_s2, 4  ;;  %s845_s21 = int_to_ptr.vmem [resolvable:$true] %s844_s21 }
  0x3a   :  { %1010 = vmatpush3.bf16.msra.mxu0 %v1007_v3  ;;  %v63_v12 = vld [vmem:[#allocation2 + $0x48] sm:$0xff]  ;;  %v64_v13 = vld [vmem:[#allocation2 + $0x50] sm:$0xff]  ;;  %v65_v14 = vld [vmem:[#allocation2 + $0x58] sm:$0xff]  ;;  %s1110_s22 = scalar_lea.vmem %s845_s21, 512  ;;  %p1115_p11 = scmp.lt.s32.totalorder %s845_s21, %s845_s21 }
  0x3b   :  { %v66_v15 = vld [vmem:[#allocation2 + $0x60] sm:$0xff]  ;;  %v67_v16 = vld [vmem:[#allocation2 + $0x68] sm:$0xff]  ;;  %v68_v17 = vld [vmem:[#allocation2 + $0x70] sm:$0xff]  ;;  %p1111_p10 = scmp.ne.s32.totalorder %s845_s21, %s1110_s22  ;;  %p1116_p12 = scmp.lt.s32.totalorder %s1110_s22, %s1110_s22 }
  0x3c   :  { %v69_v18 = vld [vmem:[#allocation2 + $0x78] sm:$0xff]  ;;  %v266_v25 = vld [vmem:[#allocation5] sm:$0xf] }
  0x3d   :  { %928 = vmatmul.mubr.msk.f32.vlgmr.msra.gmra.mrb[0].mxu0 %vm72_vm0, %v55_v4  ;;  %p1117_p13 = por %p1116_p12, %p1115_p11 }
  0x3e   :  { %930 = vmatprep.mubr.msk.f32.mxu0 %vm72_vm0, %v56_v5 }
  0x3f   :  { %p1118_p0 = pnand %p1117_p13, %p1111_p10 }
  0x41   :  { %931 = vmatmul.mubr.msk.f32.gmra.mrb[2].mxu0 %vm72_vm0, %v57_v6 }
  0x42   :  { %933 = vmatprep.mubr.msk.f32.mxu0 %vm72_vm0, %v58_v7 }
  0x45   :  { %934 = vmatmul.mubr.msk.f32.gmra.mrb[4].mxu0 %vm72_vm0, %v59_v8 }
  0x46   :  { %936 = vmatprep.mubr.msk.f32.mxu0 %vm72_vm0, %v60_v9 }
  0x49   :  { %937 = vmatmul.mubr.msk.f32.gmra.mrb[6].mxu0 %vm72_vm0, %v61_v10 }
  0x4a   :  { %939 = vmatprep.mubr.msk.f32.mxu0 %vm72_vm0, %v62_v11 }
  0x4d   :  { %940 = vmatmul.mubr.msk.f32.gmra.mrb[8].mxu0 %vm72_vm0, %v63_v12 }
  0x4e   :  { %942 = vmatprep.mubr.msk.f32.mxu0 %vm72_vm0, %v64_v13 }
  0x51   :  { %943 = vmatmul.mubr.msk.f32.gmra.mrb[10].mxu0 %vm72_vm0, %v65_v14 }
  0x52   :  { %945 = vmatprep.mubr.msk.f32.mxu0 %vm72_vm0, %v66_v15 }
  0x55   :  { %946 = vmatmul.mubr.msk.f32.gmra.mrb[12].mxu0 %vm72_vm0, %v67_v16 }
  0x56   :  { %948 = vmatprep.mubr.msk.f32.mxu0 %vm72_vm0, %v68_v17 }
  0x59   :  { %949 = vmatmul.mubr.msk.f32.gmra.mrb[14].mxu0 %vm72_vm0, %v69_v18 }
 0x110   :  { %v929_v21 = vpop.f32.mrb[0].mxu0 }
 0x111   :  { %v187_v22 = vpop.f32.mrb[1].mxu0 }
 0x112   :  { %v1012_v23 = vpack.c.bf16 %v929_v21, %v187_v22 }
 0x114   :  { %v932_v24 = vpop.f32.mrb[2].mxu0  ;;  %1013 = vmatpush3.bf16.msra.mxu1 %v1012_v23 }
 0x115   :  { %v197_v26 = vpop.f32.mrb[3].mxu0  ;;  %1014 = vmatprep.subr.bf16.mxu1 %v1143_v19 }
 0x116   :  { %v1015_v27 = vpack.c.bf16 %v932_v24, %v197_v26 }
 0x117   :  { %956 = vmatmul.mubr.msk.f32.vlgmr.msra.gmra.mrb[0].mxu1 %vm72_vm0, %v266_v25 }
 0x118   :  { %v935_v28 = vpop.f32.mrb[4].mxu0  ;;  %1016 = vmatpush3.bf16.msra.mxu1 %v1015_v27  ;;  %962 = vmatprep.mubr.msk.f32.mxu1 %vm1144_vm1, %v1145_v20 }
 0x119   :  { %v207_v29 = vpop.f32.mrb[5].mxu0  ;;  %1017 = vmatprep.subr.bf16.mxu1 %v1143_v19 }
 0x11a   :  { %v1018_v30 = vpack.c.bf16 %v935_v28, %v207_v29 }
 0x11b   :  { %963 = vmatmul.mubr.msk.f32.vlgmr.msra.gmra.mrb[2].mxu1 %vm72_vm0, %v266_v25 }
 0x11c   :  { %v938_v31 = vpop.f32.mrb[6].mxu0  ;;  %1019 = vmatpush3.bf16.msra.mxu1 %v1018_v30  ;;  %969 = vmatprep.mubr.msk.f32.mxu1 %vm1144_vm1, %v1145_v20 }
 0x11d   :  { %v217_v32 = vpop.f32.mrb[7].mxu0  ;;  %1020 = vmatprep.subr.bf16.mxu1 %v1143_v19 }
 0x11e   :  { %v1021_v33 = vpack.c.bf16 %v938_v31, %v217_v32 }
 0x11f   :  { %970 = vmatmul.mubr.msk.f32.vlgmr.msra.gmra.mrb[4].mxu1 %vm72_vm0, %v266_v25 }
 0x120   :  { %v941_v34 = vpop.f32.mrb[8].mxu0  ;;  %1022 = vmatpush3.bf16.msra.mxu1 %v1021_v33  ;;  %976 = vmatprep.mubr.msk.f32.mxu1 %vm1144_vm1, %v1145_v20 }
 0x121   :  { %v227_v35 = vpop.f32.mrb[9].mxu0  ;;  %1023 = vmatprep.subr.bf16.mxu1 %v1143_v19 }
 0x122   :  { %v1024_v36 = vpack.c.bf16 %v941_v34, %v227_v35 }
 0x123   :  { %977 = vmatmul.mubr.msk.f32.vlgmr.msra.gmra.mrb[6].mxu1 %vm72_vm0, %v266_v25 }
 0x124   :  { %v944_v37 = vpop.f32.mrb[10].mxu0  ;;  %1025 = vmatpush3.bf16.msra.mxu1 %v1024_v36  ;;  %983 = vmatprep.mubr.msk.f32.mxu1 %vm1144_vm1, %v1145_v20 }
 0x125   :  { %v237_v38 = vpop.f32.mrb[11].mxu0  ;;  %1026 = vmatprep.subr.bf16.mxu1 %v1143_v19 }
 0x126   :  { %v1027_v39 = vpack.c.bf16 %v944_v37, %v237_v38 }
 0x127   :  { %984 = vmatmul.mubr.msk.f32.vlgmr.msra.gmra.mrb[8].mxu1 %vm72_vm0, %v266_v25 }
 0x128   :  { %v947_v40 = vpop.f32.mrb[12].mxu0  ;;  %1028 = vmatpush3.bf16.msra.mxu1 %v1027_v39  ;;  %990 = vmatprep.mubr.msk.f32.mxu1 %vm1144_vm1, %v1145_v20 }
 0x129   :  { %v247_v41 = vpop.f32.mrb[13].mxu0  ;;  %1029 = vmatprep.subr.bf16.mxu1 %v1143_v19 }
 0x12a   :  { %v1030_v42 = vpack.c.bf16 %v947_v40, %v247_v41 }
 0x12b   :  { %991 = vmatmul.mubr.msk.f32.vlgmr.msra.gmra.mrb[10].mxu1 %vm72_vm0, %v266_v25 }
 0x12c   :  { %v950_v43 = vpop.f32.mrb[14].mxu0  ;;  %1031 = vmatpush3.bf16.msra.mxu1 %v1030_v42  ;;  %997 = vmatprep.mubr.msk.f32.mxu1 %vm1144_vm1, %v1145_v20 }
 0x12d   :  { %v257_v44 = vpop.f32.mrb[15].mxu0  ;;  %1032 = vmatprep.subr.bf16.mxu1 %v1143_v19 }
 0x12e   :  { %v1033_v45 = vpack.c.bf16 %v950_v43, %v257_v44 }
 0x12f   :  { %998 = vmatmul.mubr.msk.f32.vlgmr.msra.gmra.mrb[12].mxu1 %vm72_vm0, %v266_v25 }
 0x130   :  { %1034 = vmatpush3.bf16.msra.mxu1 %v1033_v45  ;;  %1004 = vmatprep.mubr.msk.f32.mxu1 %vm1144_vm1, %v1145_v20 }
 0x133   :  { %1005 = vmatmul.mubr.msk.f32.vlgmr.msra.gmra.mrb[14].mxu1 %vm72_vm0, %v266_v25 }
 0x1ea   :  { %v336_v46 = vpop.f32.mrb[0].mxu1 }
 0x1eb   :  { %341 = vst.msk [vmem:[#allocation8] sm:$0xf] %vm340_vm2, %v336_v46  ;;  %v957_v47 = vpop.f32.mrb[1].mxu1 }
 0x1ee   :  { %v408_v48 = vpop.f32.mrb[2].mxu1 }
 0x1ef   :  { %412 = vst.msk [vmem:[#allocation8 + $0x4] sm:$0xf] %vm340_vm2, %v408_v48  ;;  %v964_v49 = vpop.f32.mrb[3].mxu1 }
 0x1f2   :  { %v479_v50 = vpop.f32.mrb[4].mxu1 }
 0x1f3   :  { %483 = vst.msk [vmem:[#allocation8 + $0x8] sm:$0xf] %vm340_vm2, %v479_v50  ;;  %v971_v51 = vpop.f32.mrb[5].mxu1 }
 0x1f6   :  { %v550_v52 = vpop.f32.mrb[6].mxu1 }
 0x1f7   :  { %554 = vst.msk [vmem:[#allocation8 + $0xc] sm:$0xf] %vm340_vm2, %v550_v52  ;;  %v978_v53 = vpop.f32.mrb[7].mxu1 }
 0x1fa   :  { %v621_v54 = vpop.f32.mrb[8].mxu1 }
 0x1fb   :  { %625 = vst.msk [vmem:[#allocation8 + $0x10] sm:$0xf] %vm340_vm2, %v621_v54  ;;  %v985_v55 = vpop.f32.mrb[9].mxu1 }
 0x1fe   :  { %v692_v56 = vpop.f32.mrb[10].mxu1 }
 0x1ff   :  { %696 = vst.msk [vmem:[#allocation8 + $0x14] sm:$0xf] %vm340_vm2, %v692_v56  ;;  %v992_v57 = vpop.f32.mrb[11].mxu1 }
 0x202   :  { %v763_v58 = vpop.f32.mrb[12].mxu1 }
 0x203   :  { %767 = vst.msk [vmem:[#allocation8 + $0x18] sm:$0xf] %vm340_vm2, %v763_v58  ;;  %v999_v59 = vpop.f32.mrb[13].mxu1 }
 0x206   :  { %v834_v60 = vpop.f32.mrb[14].mxu1 }
 0x207   :  { %838 = vst.msk [vmem:[#allocation8 + $0x1c] sm:$0xf] %vm340_vm2, %v834_v60  ;;  %v1006_v61 = vpop.f32.mrb[15].mxu1 }
 0x208   :  { %1121 = shalt.err (!%p1118_p0)
}
 0x209   :  { %s1122_s25 = scalar_lea.hbm %s1274_s3, 512 }
 0x20a   :  { %p1123_p1 = scmp.ne.s32.totalorder %s1274_s3, %s1122_s25  ;;  %p1126_p2 = scmp.lt.u32.totalorder %s1122_s25, %s1274_s3 }
 0x20c   :  { %p1128_p3 = pnand %p1126_p2, %p1123_p1 }
 0x20e   :  { %1131 = shalt.err (!%p1128_p3)
}
 0x20f   :  { %850 = dma.vmem_to_hbm [thread:$0]  %s845_s21, 512, %s1274_s3, [#allocation4], %s1140_s1, %s1140_s1, %s1141_s7  }
 0x210   :  { %1136 = dma.done.wait [#allocation4], 512  }
 0x211   :  { %1137 = vsyncadd [#allocation4], 4294966784 }
 0x212   :  { %854 = vsyncpa [#allocation3], 1 }
 0x213   :  { %855 = vsyncpa [#allocation6], 1 }
 0x214   :  { %856 = vsyncpa [#allocation4], 1 }

</bundles_post_ra>
